<compile_context>
chip_gen: v7x
topology: tpu7x:2x2x1
jax: 0.10.0
libtpu: 0.0.40
codegen_flags: <defaults>
</compile_context>

<pallas_src>
import functools
import math

import jax
import jax.numpy as jnp
from jax.experimental import pallas as pl
from jax.experimental.pallas import tpu as pltpu


def _round_up(x, m):
    return ((x + m - 1) // m) * m


# Tile targets per the review (512-wide keeps the MXU stream saturated while
# staying a few MiB of VMEM even with double buffering).
_TM = 512
_TN = 512
_TK = 512


def _pick_tile(dim, target):
    """Full-dim block when dim <= target (always layout-legal, no padding);
    otherwise a `target`-sized tile with the dim padded up to a multiple."""
    if dim <= target:
        return dim, dim
    return target, _round_up(dim, target)


# ----------------------------------------------------------------------------
# Pallas kernels
# ----------------------------------------------------------------------------
def matmul_kernel(*refs, activation, fuse_ln, eps):
    # Tiled matmul with f32 VMEM accumulator; epilogue optionally fuses
    # bias + ReLU + residual-add + LayerNorm (gamma/beta).
    if fuse_ln:
        x_ref, w_ref, b_ref, res_ref, g_ref, bb_ref, o_ref, acc_ref = refs
    else:
        x_ref, w_ref, b_ref, o_ref, acc_ref = refs

    @pl.when(pl.program_id(2) == 0)
    def _():
        acc_ref[...] = jnp.zeros_like(acc_ref)

    acc_ref[...] += jnp.dot(x_ref[...], w_ref[...],
                            preferred_element_type=jnp.float32)

    @pl.when(pl.program_id(2) == pl.num_programs(2) - 1)
    def _():
        y = acc_ref[...] + b_ref[...]
        if activation == "relu":
            y = jnp.maximum(y, 0.0)
        if fuse_ln:
            # LayerNorm(residual + linear_out) over the full feature dim
            # (the N axis is a single full-width tile in this mode).
            y = y + res_ref[...].astype(jnp.float32)
            mu = jnp.mean(y, axis=-1, keepdims=True)
            var = jnp.mean((y - mu) * (y - mu), axis=-1, keepdims=True)
            y = (y - mu) * jax.lax.rsqrt(var + eps)
            y = y * g_ref[...] + bb_ref[...]
        o_ref[...] = y.astype(o_ref.dtype)


def _attend(q, k, v, keep, scale, H, dk):
    """Multi-head attention with heads packed along the feature (lane) axis.

    q: (Sq, D) bf16, k/v: (Sk, D) bf16, keep: broadcastable to (Sq, Sk) bool.
    Returns (Sq, D) f32 with per-head outputs concatenated in the same column
    order as the reference's transpose+reshape "concat heads" step.
    """
    outs = []
    for h in range(H):
        sl = slice(h * dk, (h + 1) * dk)
        s = jax.lax.dot_general(
            q[:, sl], k[:, sl],
            dimension_numbers=(((1,), (1,)), ((), ())),
            preferred_element_type=jnp.float32) * jnp.float32(scale)  # (Sq,Sk)
        s = jnp.where(keep, s, jnp.float32(-1e9))
        s = s - jnp.max(s, axis=-1, keepdims=True)
        p = jnp.exp(s)
        p = p * pl.reciprocal(jnp.sum(p, axis=-1, keepdims=True), approx=True)
        outs.append(jnp.dot(p.astype(v.dtype), v[:, sl],
                            preferred_element_type=jnp.float32))       # (Sq,dk)
    return jnp.concatenate(outs, axis=-1)                              # (Sq, D)


def self_attn_kernel(qkv_ref, pad_ref, o_ref, *, scale, causal, H, dk):
    # qkv: (1, S, 3D) bf16 (fused projection, columns [Q | K | V]),
    # pad: (1, 1, S) f32 key-padding mask, out: (1, S, D) bf16 lane-dense.
    D = H * dk
    qkv = qkv_ref[0]                              # (S, 3D)
    q, k, v = qkv[:, :D], qkv[:, D:2 * D], qkv[:, 2 * D:]
    S = q.shape[0]
    keep = pad_ref[0] > 0.0                       # (1, S)
    if causal:
        row = jax.lax.broadcasted_iota(jnp.int32, (S, S), 0)
        col = jax.lax.broadcasted_iota(jnp.int32, (S, S), 1)
        keep = jnp.logical_and(keep, col <= row)  # (S, S)
    o_ref[0] = _attend(q, k, v, keep, scale, H, dk).astype(o_ref.dtype)


def cross_attn_kernel(q_ref, kv_ref, pad_ref, o_ref, *, scale, H, dk):
    # q: (1, Sq, D), kv: (1, Sk, 2D) (fused projection, columns [K | V]),
    # pad: (1, 1, Sk), out: (1, Sq, D).
    D = H * dk
    q = q_ref[0]                                  # (Sq, D)
    kv = kv_ref[0]                                # (Sk, 2D)
    k, v = kv[:, :D], kv[:, D:]
    keep = pad_ref[0] > 0.0                       # (1, Sk)
    o_ref[0] = _attend(q, k, v, keep, scale, H, dk).astype(o_ref.dtype)


# ----------------------------------------------------------------------------
# Kernel wrappers
# ----------------------------------------------------------------------------
def _linear_call(x2d, w, b2d, res2d, gamma2d, beta2d, activation, out_dtype, eps):
    fuse_ln = res2d is not None
    M, K = x2d.shape
    K2, N = w.shape
    assert K == K2

    tm, Mp = _pick_tile(M, _TM)
    tk, Kp = _pick_tile(K, _TK)
    if fuse_ln:
        tn, Np = N, N          # LayerNorm reduces over the full feature dim
    else:
        tn, Np = _pick_tile(N, _TN)

    xp = x2d
    if (Mp, Kp) != (M, K):
        xp = jnp.pad(xp, ((0, Mp - M), (0, Kp - K)))
    wp = w
    if (Kp, Np) != (K, N):
        # No-op at the shapes used here (sub-target dims use full-dim blocks);
        # production configs should pre-pad weights once at init instead.
        wp = jnp.pad(wp, ((0, Kp - K), (0, Np - N)))
    bp = b2d
    if Np != N:
        bp = jnp.pad(bp, ((0, 0), (0, Np - N)))

    in_specs = [
        pl.BlockSpec((tm, tk), lambda i, j, k: (i, k)),
        pl.BlockSpec((tk, tn), lambda i, j, k: (k, j)),
        pl.BlockSpec((1, tn), lambda i, j, k: (0, j)),
    ]
    inputs = [xp, wp, bp]
    if fuse_ln:
        rp = res2d
        if Mp != M:
            rp = jnp.pad(rp, ((0, Mp - M), (0, 0)))
        in_specs += [
            pl.BlockSpec((tm, tn), lambda i, j, k: (i, j)),
            pl.BlockSpec((1, tn), lambda i, j, k: (0, j)),
            pl.BlockSpec((1, tn), lambda i, j, k: (0, j)),
        ]
        inputs += [rp, gamma2d, beta2d]

    kernel = functools.partial(matmul_kernel, activation=activation,
                               fuse_ln=fuse_ln, eps=eps)
    out = pl.pallas_call(
        kernel,
        out_shape=jax.ShapeDtypeStruct((Mp, Np), out_dtype),
        grid=(Mp // tm, Np // tn, Kp // tk),        # reduction (K) axis last
        in_specs=in_specs,
        out_specs=pl.BlockSpec((tm, tn), lambda i, j, k: (i, j)),
        scratch_shapes=[pltpu.VMEM((tm, tn), jnp.float32)],
        compiler_params=pltpu.CompilerParams(
            dimension_semantics=("parallel", "parallel", "arbitrary"),
            # 48 MiB fits every generation (v7x has 64 MiB physical VMEM);
            # tiles chosen above use only a few MiB even double-buffered.
            vmem_limit_bytes=48 * 1024 * 1024,
        ),
    )(*inputs)
    if (Mp, Np) != (M, N):
        out = out[:M, :N]
    return out


def linear(x2d, w, b2d, activation=None, out_dtype=jnp.bfloat16):
    return _linear_call(x2d, w, b2d, None, None, None, activation, out_dtype, 0.0)


def linear_add_layernorm(x2d, w, b2d, res2d, gamma2d, beta2d, eps=1e-5):
    """LayerNorm(res2d + (x2d @ w + b)) fused into the matmul epilogue."""
    return _linear_call(x2d, w, b2d, res2d, gamma2d, beta2d, None,
                        jnp.bfloat16, eps)


def self_attention_core(qkv2d, pad, B, S, H, dk, causal):
    D = H * dk
    qkv = qkv2d.reshape(B, S, 3 * D)          # free (contiguous) reshape
    kernel = functools.partial(self_attn_kernel, scale=1.0 / math.sqrt(dk),
                               causal=causal, H=H, dk=dk)
    o = pl.pallas_call(
        kernel,
        out_shape=jax.ShapeDtypeStruct((B, S, D), jnp.bfloat16),
        grid=(B,),
        in_specs=[
            pl.BlockSpec((1, S, 3 * D), lambda b: (b, 0, 0)),
            pl.BlockSpec((1, 1, S), lambda b: (b, 0, 0)),
        ],
        out_specs=pl.BlockSpec((1, S, D), lambda b: (b, 0, 0)),
        compiler_params=pltpu.CompilerParams(dimension_semantics=("parallel",)),
    )(qkv, pad)
    return o.reshape(B * S, D)


def cross_attention_core(q2d, kv2d, pad, B, Sq, Sk, H, dk):
    D = H * dk
    q = q2d.reshape(B, Sq, D)
    kv = kv2d.reshape(B, Sk, 2 * D)
    kernel = functools.partial(cross_attn_kernel, scale=1.0 / math.sqrt(dk),
                               H=H, dk=dk)
    o = pl.pallas_call(
        kernel,
        out_shape=jax.ShapeDtypeStruct((B, Sq, D), jnp.bfloat16),
        grid=(B,),
        in_specs=[
            pl.BlockSpec((1, Sq, D), lambda b: (b, 0, 0)),
            pl.BlockSpec((1, Sk, 2 * D), lambda b: (b, 0, 0)),
            pl.BlockSpec((1, 1, Sk), lambda b: (b, 0, 0)),
        ],
        out_specs=pl.BlockSpec((1, Sq, D), lambda b: (b, 0, 0)),
        compiler_params=pltpu.CompilerParams(dimension_semantics=("parallel",)),
    )(q, kv, pad)
    return o.reshape(B * Sq, D)


# ----------------------------------------------------------------------------
# Model pieces (glue in plain JAX, compute via kernels above)
# ----------------------------------------------------------------------------
def encoder_layer(x2d, src_pad, p, B, S, H, dk):
    a = linear(x2d, p["attn"]["w_qkv"], p["attn"]["b_qkv"])        # fused QKV
    a = self_attention_core(a, src_pad, B, S, H, dk, causal=False)
    x2d = linear_add_layernorm(a, p["attn"]["wo"], p["attn"]["bo"],
                               x2d, p["ln1_g"], p["ln1_b"])
    h = linear(x2d, p["ffn"]["w1"], p["ffn"]["b1"], activation="relu")
    x2d = linear_add_layernorm(h, p["ffn"]["w2"], p["ffn"]["b2"],
                               x2d, p["ln2_g"], p["ln2_b"])
    return x2d


def decoder_layer(y2d, enc2d, src_pad, trg_pad, p, B, St, Ss, H, dk):
    a = linear(y2d, p["self_attn"]["w_qkv"], p["self_attn"]["b_qkv"])
    a = self_attention_core(a, trg_pad, B, St, H, dk, causal=True)
    y2d = linear_add_layernorm(a, p["self_attn"]["wo"], p["self_attn"]["bo"],
                               y2d, p["ln1_g"], p["ln1_b"])
    q = linear(y2d, p["cross_attn"]["wq"], p["cross_attn"]["bq"])
    kv = linear(enc2d, p["cross_attn"]["w_kv"], p["cross_attn"]["b_kv"])
    c = cross_attention_core(q, kv, src_pad, B, St, Ss, H, dk)
    y2d = linear_add_layernorm(c, p["cross_attn"]["wo"], p["cross_attn"]["bo"],
                               y2d, p["ln2_g"], p["ln2_b"])
    f = linear(y2d, p["ffn"]["w1"], p["ffn"]["b1"], activation="relu")
    y2d = linear_add_layernorm(f, p["ffn"]["w2"], p["ffn"]["b2"],
                               y2d, p["ln3_g"], p["ln3_b"])
    return y2d


def sinusoidal_pos_encoding(max_len, d_model):
    pos = jnp.arange(max_len, dtype=jnp.float32)[:, None]
    i = jnp.arange(0, d_model, 2, dtype=jnp.float32)[None, :]
    angle = pos / jnp.power(10000.0, i / d_model)
    pe = jnp.zeros((max_len, d_model), jnp.float32)
    pe = pe.at[:, 0::2].set(jnp.sin(angle))
    pe = pe.at[:, 1::2].set(jnp.cos(angle))
    return pe.astype(jnp.bfloat16)


def transformer_forward(params, src, trg, cfg):
    H, dk = cfg["head_dim"], cfg["qkv_dim"]
    D = H * dk
    B, Ss = src.shape
    _, St = trg.shape

    # Key-padding masks kept tiny: (B, 1, Sk) f32; causal mask built in-kernel.
    src_pad = (src != 0).astype(jnp.float32).reshape(B, 1, Ss)
    trg_pad = jnp.ones((B, 1, St), jnp.float32)   # reference trg mask is causal-only

    pe = params["pos_enc"]

    # TODO(synk): embedding gather stays in plain JAX (jnp.take); a Pallas
    # gather kernel is not worth it at these sizes.
    x = (jnp.take(params["src_emb"], src, axis=0) + pe[None, :Ss, :]).astype(jnp.bfloat16)
    x2d = x.reshape(B * Ss, D)
    for lp in params["enc_layers"]:
        x2d = encoder_layer(x2d, src_pad, lp, B, Ss, H, dk)
    enc2d = x2d

    y = (jnp.take(params["trg_emb"], trg, axis=0) + pe[None, :St, :]).astype(jnp.bfloat16)
    y2d = y.reshape(B * St, D)
    for lp in params["dec_layers"]:
        y2d = decoder_layer(y2d, enc2d, src_pad, trg_pad, lp, B, St, Ss, H, dk)

    # Final projection to target vocabulary (f32 logits).
    out = linear(y2d, params["out_w"], params["out_b"], out_dtype=jnp.float32)
    return out.reshape(B, St, cfg["trg_vocab"])


# ----------------------------------------------------------------------------
# Deterministic parameter initialization (xavier_uniform for dim>1, zeros bias).
# Weights pre-cast to bf16 and biases / LN params pre-shaped to (1, N) f32 once
# here, so the forward pass does no parameter casting/reshaping.
# ----------------------------------------------------------------------------
def xavier(key, shape):
    fan_in, fan_out = shape
    bound = math.sqrt(6.0 / (fan_in + fan_out))
    return jax.random.uniform(key, shape, jnp.float32, -bound, bound)


def init_self_attn(key, D):
    ks = jax.random.split(key, 4)
    wq, wk, wv = xavier(ks[0], (D, D)), xavier(ks[1], (D, D)), xavier(ks[2], (D, D))
    return {
        "w_qkv": jnp.concatenate([wq, wk, wv], axis=1).astype(jnp.bfloat16),
        "b_qkv": jnp.zeros((1, 3 * D), jnp.float32),
        "wo": xavier(ks[3], (D, D)).astype(jnp.bfloat16),
        "bo": jnp.zeros((1, D), jnp.float32),
    }


def init_cross_attn(key, D):
    ks = jax.random.split(key, 4)
    return {
        "wq": xavier(ks[0], (D, D)).astype(jnp.bfloat16),
        "bq": jnp.zeros((1, D), jnp.float32),
        "w_kv": jnp.concatenate([xavier(ks[1], (D, D)),
                                 xavier(ks[2], (D, D))], axis=1).astype(jnp.bfloat16),
        "b_kv": jnp.zeros((1, 2 * D), jnp.float32),
        "wo": xavier(ks[3], (D, D)).astype(jnp.bfloat16),
        "bo": jnp.zeros((1, D), jnp.float32),
    }


def init_ffn(key, D, F):
    ks = jax.random.split(key, 2)
    return {
        "w1": xavier(ks[0], (D, F)).astype(jnp.bfloat16),
        "b1": jnp.zeros((1, F), jnp.float32),
        "w2": xavier(ks[1], (F, D)).astype(jnp.bfloat16),
        "b2": jnp.zeros((1, D), jnp.float32),
    }


def _ln_pair(D):
    return jnp.ones((1, D), jnp.float32), jnp.zeros((1, D), jnp.float32)


def init_params(key, cfg):
    D = cfg["qkv_dim"] * cfg["head_dim"]
    F = cfg["ffn_dim"]
    keys = jax.random.split(key, 64)
    ki = iter(range(64))

    params = {
        "src_emb": xavier(keys[next(ki)], (cfg["src_vocab"], D)).astype(jnp.bfloat16),
        "trg_emb": xavier(keys[next(ki)], (cfg["trg_vocab"], D)).astype(jnp.bfloat16),
        "pos_enc": sinusoidal_pos_encoding(cfg["max_len"], D),
        "out_w": xavier(keys[next(ki)], (D, cfg["trg_vocab"])).astype(jnp.bfloat16),
        "out_b": jnp.zeros((1, cfg["trg_vocab"]), jnp.float32),
        "enc_layers": [],
        "dec_layers": [],
    }
    for _ in range(cfg["stack_num"]):
        g1, b1 = _ln_pair(D)
        g2, b2 = _ln_pair(D)
        params["enc_layers"].append({
            "attn": init_self_attn(keys[next(ki)], D),
            "ffn": init_ffn(keys[next(ki)], D, F),
            "ln1_g": g1, "ln1_b": b1,
            "ln2_g": g2, "ln2_b": b2,
        })
    for _ in range(cfg["stack_num"]):
        g1, b1 = _ln_pair(D)
        g2, b2 = _ln_pair(D)
        g3, b3 = _ln_pair(D)
        params["dec_layers"].append({
            "self_attn": init_self_attn(keys[next(ki)], D),
            "cross_attn": init_cross_attn(keys[next(ki)], D),
            "ffn": init_ffn(keys[next(ki)], D, F),
            "ln1_g": g1, "ln1_b": b1,
            "ln2_g": g2, "ln2_b": b2,
            "ln3_g": g3, "ln3_b": b3,
        })
    return params


# ----------------------------------------------------------------------------
if __name__ == "__main__":
    cfg = {
        "src_vocab": 50,
        "trg_vocab": 60,
        "qkv_dim": 8,      # per-head dim
        "head_dim": 4,     # number of heads  (embedding_dim = 8 * 4 = 32)
        "ffn_dim": 64,
        "stack_num": 2,
        "max_len": 16,
    }
    B, Ss, St = 2, 8, 8

    root = jax.random.PRNGKey(0)
    k_params, k_src, k_trg = jax.random.split(root, 3)
    params = init_params(k_params, cfg)

    src = jax.random.randint(k_src, (B, Ss), 0, cfg["src_vocab"], dtype=jnp.int32)
    trg = jax.random.randint(k_trg, (B, St), 0, cfg["trg_vocab"], dtype=jnp.int32)
    # Guarantee some padding tokens so the src mask is exercised.
    src = src.at[:, -2:].set(0)

    out = transformer_forward(params, src, trg, cfg)
    out = jax.block_until_ready(out)

    assert out.shape == (B, St, cfg["trg_vocab"]), out.shape
    assert bool(jnp.all(jnp.isfinite(out)))
    print("KERNEL_OK")
</pallas_src>

<mosaic_0001>
module attributes {stable_mosaic.version = 11 : i64} {
  func.func @matmul_kernel(%arg0: i32, %arg1: i32, %arg2: i32, %arg3: memref<16x32xbf16, #tpu.memory_space<vmem>>, %arg4: memref<32x96xbf16, #tpu.memory_space<vmem>>, %arg5: memref<1x96xf32, #tpu.memory_space<vmem>>, %arg6: memref<16x96xbf16, #tpu.memory_space<vmem>>, %arg7: memref<16x96xf32, #tpu.memory_space<vmem>>) attributes {dimension_semantics = [#tpu.dimension_semantics<parallel>, #tpu.dimension_semantics<parallel>, #tpu.dimension_semantics<arbitrary>], iteration_bounds = array<i64: 1, 1, 1>, scalar_prefetch = 0 : i64, scratch_operands = 1 : i64, tpu.core_type = #tpu.core_type<tc>, window_params = [{transform_indices = @transform_0, window_bounds = array<i64: 16, 32>}, {transform_indices = @transform_1, window_bounds = array<i64: 32, 96>}, {transform_indices = @transform_2, window_bounds = array<i64: 1, 96>}, {transform_indices = @transform_3, window_bounds = array<i64: 16, 96>}]} {
    %c0_i32 = arith.constant 0 : i32
    %0 = arith.cmpi eq, %arg2, %c0_i32 : i32
    %1 = arith.extui %0 : i1 to i32
    %c0_i32_0 = arith.constant 0 : i32
    %2 = arith.cmpi ne, %1, %c0_i32_0 : i32
    scf.if %2 {
      %cst_10 = arith.constant 0.000000e+00 : f32
      %12 = vector.broadcast %cst_10 : f32 to vector<16x96xf32>
      %c0_11 = arith.constant 0 : index
      %c0_12 = arith.constant 0 : index
      %13 = vector.load %arg7[%c0_11, %c0_12] : memref<16x96xf32, #tpu.memory_space<vmem>>, vector<16x96xf32>
      tpu.vector_store %arg7[%c0_11, %c0_12], %12 {strides = array<i32>} : memref<16x96xf32, #tpu.memory_space<vmem>>, vector<16x96xf32>,
    } else {
    }
    %c0 = arith.constant 0 : index
    %c0_1 = arith.constant 0 : index
    %3 = vector.load %arg7[%c0, %c0_1] : memref<16x96xf32, #tpu.memory_space<vmem>>, vector<16x96xf32>
    %c0_2 = arith.constant 0 : index
    %c0_3 = arith.constant 0 : index
    %4 = vector.load %arg3[%c0_2, %c0_3] : memref<16x32xbf16, #tpu.memory_space<vmem>>, vector<16x32xbf16>
    %c0_4 = arith.constant 0 : index
    %c0_5 = arith.constant 0 : index
    %5 = vector.load %arg4[%c0_4, %c0_5] : memref<32x96xbf16, #tpu.memory_space<vmem>>, vector<32x96xbf16>
    %cst = arith.constant dense<0.000000e+00> : vector<16x96xf32>
    %6 = tpu.matmul %4, %5, %cst {dimension_numbers = #tpu.dot_dimension_numbers<[1], [0], [0], [1], [0, 0, 1, 1], [], []>} : vector<16x32xbf16>, vector<32x96xbf16>, vector<16x96xf32> -> vector<16x96xf32>
    %7 = arith.addf %3, %6 : vector<16x96xf32>
    %c0_6 = arith.constant 0 : index
    %c0_7 = arith.constant 0 : index
    %8 = vector.load %arg7[%c0_6, %c0_7] : memref<16x96xf32, #tpu.memory_space<vmem>>, vector<16x96xf32>
    tpu.vector_store %arg7[%c0_6, %c0_7], %7 {strides = array<i32>} : memref<16x96xf32, #tpu.memory_space<vmem>>, vector<16x96xf32>,
    %c0_i32_8 = arith.constant 0 : i32
    %9 = arith.cmpi eq, %arg2, %c0_i32_8 : i32
    %10 = arith.extui %9 : i1 to i32
    %c0_i32_9 = arith.constant 0 : i32
    %11 = arith.cmpi ne, %10, %c0_i32_9 : i32
    scf.if %11 {
      %c0_10 = arith.constant 0 : index
      %c0_11 = arith.constant 0 : index
      %12 = vector.load %arg7[%c0_10, %c0_11] : memref<16x96xf32, #tpu.memory_space<vmem>>, vector<16x96xf32>
      %c0_12 = arith.constant 0 : index
      %c0_13 = arith.constant 0 : index
      %13 = vector.load %arg5[%c0_12, %c0_13] : memref<1x96xf32, #tpu.memory_space<vmem>>, vector<1x96xf32>
      %14 = vector.broadcast %13 : vector<1x96xf32> to vector<16x96xf32>
      %15 = arith.addf %12, %14 : vector<16x96xf32>
      %16 = arith.truncf %15 : vector<16x96xf32> to vector<16x96xbf16>
      %c0_14 = arith.constant 0 : index
      %c0_15 = arith.constant 0 : index
      %17 = vector.load %arg6[%c0_14, %c0_15] : memref<16x96xbf16, #tpu.memory_space<vmem>>, vector<16x96xbf16>
      tpu.vector_store %arg6[%c0_14, %c0_15], %16 {strides = array<i32>} : memref<16x96xbf16, #tpu.memory_space<vmem>>, vector<16x96xbf16>,
    } else {
    }
    return
  }
  func.func @transform_0(%arg0: i32, %arg1: i32, %arg2: i32) -> (i32, i32) {
    %c0_i32 = arith.constant 0 : i32
    return %arg0, %arg2 : i32, i32
  }
  func.func @transform_1(%arg0: i32, %arg1: i32, %arg2: i32) -> (i32, i32) {
    %c0_i32 = arith.constant 0 : i32
    return %arg2, %arg1 : i32, i32
  }
  func.func @transform_2(%arg0: i32, %arg1: i32, %arg2: i32) -> (i32, i32) {
    %c0_i32 = arith.constant 0 : i32
    %c0_i32_0 = arith.constant 0 : i32
    return %c0_i32, %arg1 : i32, i32
  }
  func.func @transform_3(%arg0: i32, %arg1: i32, %arg2: i32) -> (i32, i32) {
    %c0_i32 = arith.constant 0 : i32
    return %arg0, %arg1 : i32, i32
  }
}

</mosaic_0001>

<bundles_post_ra>
// kernel: tpu_custom_call.1
= control target key start
LH: loop header
LB: loop body
LE: loop exit
PB: predicated region body
PF: predicated region fallthrough
CT: control target
= control target key end

     0   :  { %8 = vsyncpa [#allocation4], 0  ;;  %s350_s0 = inlined_call_operand.hbm [shape: bf16[16,32], index: 0, kind: input, shape index: {}]   ;;  %s351_s1 = inlined_call_operand.hbm [shape: bf16[32,96], index: 1, kind: input, shape index: {}]   ;;  %s352_s2 = inlined_call_operand.vmem [shape: f32[1,96], index: 2, kind: input, shape index: {}]   ;;  %s353_s3 = inlined_call_operand.hbm [shape: bf16[16,96], index: 3, kind: output, shape index: {}]  }
   0x1   :  { %9 = vsyncpa [#allocation7], 0 }
   0x2   :  { %10 = vsyncpa [#allocation5], 0  ;;  %s271_s12 = smov [#allocation3]   ;;  %s199_s16 = scalar_lea.hbm %s350_s0, 128 }
   0x3   :  { %s16_s13 = sshll.u32 %s271_s12, 4  ;;  %p200_p0 = scmp.ne.s32.totalorder %s350_s0, %s199_s16  ;;  %s17_s13 = int_to_ptr.vmem [resolvable:$true] %s16_s13 }
   0x4   :  { %p203_p1 = scmp.lt.u32.totalorder %s199_s16, %s350_s0 }
   0x6   :  { %p205_p2 = pnand %p203_p1, %p200_p0 }
   0x8   :  { %208 = shalt.err (!%p205_p2)
}
   0x9   :  { %s209_s21 = scalar_lea.vmem %s17_s13, 128  ;;  %p214_p4 = scmp.lt.s32.totalorder %s17_s13, %s17_s13 }
   0xa   :  { %p210_p3 = scmp.ne.s32.totalorder %s17_s13, %s209_s21  ;;  %p215_p5 = scmp.lt.s32.totalorder %s209_s21, %s209_s21 }
   0xc   :  { %p216_p6 = por %p215_p5, %p214_p4 }
   0xe   :  { %p217_p7 = pnand %p216_p6, %p210_p3 }
  0x10   :  { %220 = shalt.err (!%p217_p7)
}
  0x11   :  { %s272_s22 = smov 64   ;;  %s273_s23 = smov 4  }
  0x12   :  { %22 = dma.hbm_to_vmem [thread:$0]  %s350_s0, 128, %s17_s13, [#allocation4], %s272_s22, %s272_s22, %s273_s23  }
  0x13   :  { %s274_s26 = smov [#allocation6]   ;;  %s221_s30 = scalar_lea.hbm %s351_s1, 256 }
  0x14   :  { %s28_s27 = sshll.u32 %s274_s26, 4  ;;  %p222_p8 = scmp.ne.s32.totalorder %s351_s1, %s221_s30  ;;  %s29_s27 = int_to_ptr.vmem [resolvable:$true] %s28_s27 }
  0x15   :  { %p225_p9 = scmp.lt.u32.totalorder %s221_s30, %s351_s1 }
  0x17   :  { %p227_p10 = pnand %p225_p9, %p222_p8 }
  0x19   :  { %230 = shalt.err (!%p227_p10)
}
  0x1a   :  { %s231_s8 = scalar_lea.vmem %s29_s27, 256  ;;  %p236_p12 = scmp.lt.s32.totalorder %s29_s27, %s29_s27 }
  0x1b   :  { %p232_p11 = scmp.ne.s32.totalorder %s29_s27, %s231_s8  ;;  %p237_p13 = scmp.lt.s32.totalorder %s231_s8, %s231_s8 }
  0x1d   :  { %p238_p0 = por %p237_p13, %p236_p12 }
  0x1f   :  { %p239_p1 = pnand %p238_p0, %p232_p11 }
  0x21   :  { %242 = shalt.err (!%p239_p1)
}
  0x22   :  { %34 = dma.hbm_to_vmem [thread:$0]  %s351_s1, 256, %s29_s27, [#allocation7], %s272_s22, %s272_s22, %s273_s23  }
  0x23   :  { %265 = dma.done.wait [#allocation4], 128  }
  0x24   :  { %266 = vsyncadd [#allocation4], 4294967168 }
  0x25   :  { %267 = dma.done.wait [#allocation7], 256  }
  0x26   :  { %268 = vsyncadd [#allocation7], 4294967040  ;;  %vm48_vm0 = vcmask 785408   ;;  %v275_v0 = vmov 0.0   ;;  %vm276_vm1 = vmmov 0   ;;  %v196_v1 = vld [vmem:[#allocation6] sm:$0xff]  }
  0x27   :  { %49 = vst.msk [vmem:[#allocation2] sm:$0xff] %vm48_vm0, %v275_v0  ;;  %50 = vst.msk [vmem:[#allocation2 + $0x8] sm:$0xff] %vm48_vm0, %v275_v0  ;;  %181 = vmatprep.subr.bf16.mxu0 %v275_v0  ;;  %185 = vmatprep.mubr.msk.bf16.mxu0 %vm276_vm1, %v275_v0  ;;  %v197_v2 = vld [vmem:[#allocation6 + $0x8] sm:$0xff]   ;;  %v198_v3 = vld [vmem:[#allocation3] sm:$0xff]   ;;  %vm76_vm2 = vcmask 261120   ;;  %vm148_vm3 = vcmask 781312  }
  0x28   :  { %182 = vmatpush3.bf16.msra.mxu0 %v196_v1  ;;  %v173_v12 = vld [vmem:[%s352_s2] ss:$0 sm:$0xff]  ;;  %s277_s11 = smov [#allocation8]  }
  0x29   :  { %183 = vmatprep.subr.bf16.mxu0 %v275_v0  ;;  %s156_s12 = sshll.u32 %s277_s11, 4  ;;  %s157_s12 = int_to_ptr.vmem [resolvable:$true] %s156_s12 }
  0x2a   :  { %s243_s13 = scalar_lea.vmem %s157_s12, 128  ;;  %p248_p3 = scmp.lt.s32.totalorder %s157_s12, %s157_s12 }
  0x2b   :  { %p244_p2 = scmp.ne.s32.totalorder %s157_s12, %s243_s13  ;;  %p249_p4 = scmp.lt.s32.totalorder %s243_s13, %s243_s13 }
  0x2c   :  { %184 = vmatpush3.bf16.msra.mxu0 %v197_v2 }
  0x2d   :  { %p250_p5 = por %p249_p4, %p248_p3 }
  0x2e   :  { %v51_v4 = vld [vmem:[#allocation2] sm:$0xff]  ;;  %v52_v6 = vld [vmem:[#allocation2 + $0x8] sm:$0xff] }
  0x2f   :  { %186 = vmatmul.mubr.msk.bf16.vlgmr.msra.gmra.mrb[0].mxu0 %vm76_vm2, %v198_v3  ;;  %p251_p6 = pnand %p250_p5, %p244_p2 }
 0x102   :  { %v114_v5 = vpop.f32.mrb[0].mxu0 }
 0x103   :  { %v121_v7 = vadd.f32 %v114_v5, %v51_v4  ;;  %v187_v8 = vpop.f32.mrb[1].mxu0 }
 0x104   :  { %v117_v9 = vpop.f32.mrb[2].mxu0 }
 0x105   :  { %124 = vst.msk [vmem:[#allocation2] sm:$0xff] %vm48_vm0, %v121_v7  ;;  %v122_v10 = vadd.f32 %v117_v9, %v52_v6  ;;  %v188_v11 = vpop.f32.mrb[3].mxu0 }
 0x107   :  { %125 = vst.msk [vmem:[#allocation2 + $0x8] sm:$0xff] %vm48_vm0, %v122_v10 }
 0x10c   :  { %v129_v13 = vld [vmem:[#allocation2] sm:$0xff] }
 0x10d   :  { %v138_v14 = vadd.f32 %v173_v12, %v129_v13 }
 0x10e   :  { %v130_v15 = vld [vmem:[#allocation2 + $0x8] sm:$0xff] }
 0x10f   :  { %v139_v16 = vadd.f32 %v173_v12, %v130_v15  ;;  %v176_v17 = vpack.c.bf16 %v138_v14, %v138_v14 }
 0x111   :  { %v177_v18 = vpack.c.bf16 %v139_v16, %v139_v16  ;;  %149 = vst.msk [vmem:[#allocation8] sm:$0xf] %vm148_vm3, %v176_v17 }
 0x113   :  { %150 = vst.msk [vmem:[#allocation8 + $0x4] sm:$0xf] %vm148_vm3, %v177_v18 }
 0x114   :  { %254 = shalt.err (!%p251_p6)
}
 0x115   :  { %s255_s15 = scalar_lea.hbm %s353_s3, 128 }
 0x116   :  { %p256_p7 = scmp.ne.s32.totalorder %s353_s3, %s255_s15  ;;  %p259_p8 = scmp.lt.u32.totalorder %s255_s15, %s353_s3 }
 0x118   :  { %p261_p9 = pnand %p259_p8, %p256_p7 }
 0x11a   :  { %264 = shalt.err (!%p261_p9)
}
 0x11b   :  { %162 = dma.vmem_to_hbm [thread:$0]  %s157_s12, 128, %s353_s3, [#allocation5], %s272_s22, %s272_s22, %s273_s23  }
 0x11c   :  { %269 = dma.done.wait [#allocation5], 128  }
 0x11d   :  { %270 = vsyncadd [#allocation5], 4294967168 }
 0x11e   :  { %166 = vsyncpa [#allocation4], 1 }
 0x11f   :  { %167 = vsyncpa [#allocation7], 1 }
 0x120   :  { %168 = vsyncpa [#allocation5], 1 }

</bundles_post_ra>
